<compile_context>
chip_gen: v7x
topology: tpu7x:2x2x1
jax: 0.10.0
libtpu: 0.0.40
codegen_flags: <defaults>
</compile_context>

<pallas_src>
import functools

import jax
import jax.numpy as jnp
from jax.experimental import pallas as pl
from jax.experimental.pallas import tpu as pltpu

_HID = 512     # nn.Linear(seq_len, 512) / nn.Linear(seq_len*period_len, 512)
_CAT = 1024    # concat width feeding nn.Linear(1024, pred_len)


def _pad_to(n, q):
    return ((n + q - 1) // q) * q


# ----------------------------------------------------------------------------
# Kernel: one tile of flattened (batch, channel) rows through the whole MLP.
# ----------------------------------------------------------------------------
def _mlp_kernel(x_ref, xr_ref, wi_ref, bi_ref, wr_ref, br_ref,
                wo1_ref, wo2_ref, bo_ref, out_ref, *, mode):
    # x_ref:(tm,seq_len) bf16  xr_ref:(tm,raw_len) bf16
    # wi:(seq_len,512) wr:(raw_len,512) wo1/wo2:(512,pred_len)  bf16
    # biases:(1,N) f32          out_ref:(tm,pred_len) f32
    h1 = jnp.dot(x_ref[...], wi_ref[...],
                 preferred_element_type=jnp.float32) + bi_ref[...]
    h2 = jnp.dot(xr_ref[...], wr_ref[...],
                 preferred_element_type=jnp.float32) + br_ref[...]

    if mode == 'std':                      # activation math in f32
        h1 = jnp.maximum(h1, 0.0)
        h2 = jnp.maximum(h2, 0.0)
    else:
        h1 = jnp.tanh(h1)
        h2 = jnp.tanh(h2)

    # output(cat([h1, h2])) == h1 @ W_out[:, :512].T + h2 @ W_out[:, 512:].T
    out = (jnp.dot(h1.astype(jnp.bfloat16), wo1_ref[...],
                   preferred_element_type=jnp.float32)
           + jnp.dot(h2.astype(jnp.bfloat16), wo2_ref[...],
                     preferred_element_type=jnp.float32)
           + bo_ref[...])
    if mode == 'std':                      # final_activation = ReLU / Identity
        out = jnp.maximum(out, 0.0)

    out_ref[...] = out.astype(out_ref.dtype)


# ----------------------------------------------------------------------------
# Wrapper helpers
# ----------------------------------------------------------------------------
def _vmem_capacity_bytes():
    """Physical VMEM of the current TPU generation (v7x-safe fallback)."""
    get_info = getattr(pltpu, "get_tpu_info", None)
    if get_info is not None:
        try:
            cap = int(get_info().vmem_capacity_bytes)
            if cap > 0:
                return cap
        except Exception:
            pass
    return 64 * 1024 * 1024        # v7x has 64 MiB/TC; v5e/v6e have 128 MiB.


def _resident_spec(block_shape, single_buffer):
    """BlockSpec for a grid-invariant operand; single-buffered when supported."""
    zeros = (0,) * len(block_shape)
    index_map = lambda i: zeros
    if single_buffer:
        try:
            return pl.BlockSpec(block_shape, index_map,
                                pipeline_mode=pl.Buffered(1))
        except (AttributeError, TypeError):
            pass
    return pl.BlockSpec(block_shape, index_map)


def _pick_row_tile(m_rows, per_row_bytes, budget_bytes, min_grid=2):
    """Row-tile (multiple of 8) and padded row count giving grid >= min_grid."""
    m8 = _pad_to(max(m_rows, 1), 8)
    m8 = max(m8, 8 * min_grid)                         # never a single grid step
    cap = max(8, min(1024,
                     (budget_bytes // max(per_row_bytes, 1)) // 8 * 8,
                     (m8 // min_grid) // 8 * 8))
    for tm in range(cap, 7, -8):                       # largest exact divisor
        if m8 % tm == 0:
            return tm, m8
    return 8, m8


def init_mlp_params(key, seq_len, pred_len, period_len):
    """Synthetic params in nn.Linear layout: weight (out_features, in_features)."""
    k1, k2, k3, k4, k5, k6 = jax.random.split(key, 6)
    raw_len = seq_len * period_len
    s_in = 1.0 / float(seq_len) ** 0.5
    s_raw = 1.0 / float(raw_len) ** 0.5
    s_out = 1.0 / float(_CAT) ** 0.5
    u = lambda k, shape, s: jax.random.uniform(k, shape, jnp.float32, -s, s)
    return dict(
        w_in=u(k1, (_HID, seq_len), s_in),     b_in=u(k2, (_HID,), s_in),
        w_raw=u(k3, (_HID, raw_len), s_raw),   b_raw=u(k4, (_HID,), s_raw),
        w_out=u(k5, (pred_len, _CAT), s_out),  b_out=u(k6, (pred_len,), s_out),
    )


# ----------------------------------------------------------------------------
# Forward
# ----------------------------------------------------------------------------
def mlp_forward(x, x_raw, params, mode, single_buffer_weights=True):
    """x: (B, seq_len, C), x_raw: (B, seq_len*period_len, C) -> (B, pred_len, C)."""
    B, seq_len, C = x.shape
    raw_len = x_raw.shape[1]
    pred_len = params['w_out'].shape[0]
    M = B * C

    # Channel-first + row-flattening (each (batch, channel) pair is one row);
    # emit bf16 so the kernel HBM read is halved.
    xf = jnp.transpose(x, (0, 2, 1)).reshape(M, seq_len).astype(jnp.bfloat16)
    xrf = jnp.transpose(x_raw, (0, 2, 1)).reshape(M, raw_len).astype(jnp.bfloat16)

    # nn.Linear weights (out, in) transposed once to MXU-friendly (K, N) bf16.
    wi = params['w_in'].T.astype(jnp.bfloat16)               # (seq_len, 512)
    wr = params['w_raw'].T.astype(jnp.bfloat16)              # (raw_len, 512)
    wo1 = params['w_out'][:, :_HID].T.astype(jnp.bfloat16)   # (512, pred_len)
    wo2 = params['w_out'][:, _HID:].T.astype(jnp.bfloat16)   # (512, pred_len)
    bi = params['b_in'].reshape(1, _HID).astype(jnp.float32)
    br = params['b_raw'].reshape(1, _HID).astype(jnp.float32)
    bo = params['b_out'].reshape(1, pred_len).astype(jnp.float32)

    # ---- padding-aware VMEM accounting & generation-aware budget -------------
    p_s = _pad_to(seq_len, 128)
    p_r = _pad_to(raw_len, 128)
    p_p = _pad_to(pred_len, 128)
    per_row_bytes = (
        2 * 2 * (p_s + p_r)        # double-buffered bf16 input tiles (lane-padded)
        + 2 * 4 * _HID             # h1, h2 f32 temporaries
        + 2 * 2 * _HID             # bf16 copies of h1, h2 feeding the output GEMM
        + 3 * 4 * p_p              # double-buffered f32 output tile + in-kernel temp
    )
    weight_bytes = 2 * (           # conservatively assume double-buffered weights
        2 * (_pad_to(seq_len, 8) * _HID + _pad_to(raw_len, 8) * _HID
             + 2 * _HID * p_p)     # bf16 weights (sublane/lane padded)
        + 4 * 8 * (2 * _HID + p_p) # f32 biases (sublane-padded)
    )
    vmem_cap = _vmem_capacity_bytes()
    vmem_limit = max(32 * 1024 * 1024,
                     min(int(vmem_cap * 0.75), 100 * 1024 * 1024))
    tile_budget = max(vmem_limit - weight_bytes - 6 * 1024 * 1024,
                      2 * 1024 * 1024)
    tm, m_pad = _pick_row_tile(M, per_row_bytes, tile_budget)

    if m_pad != M:                 # zero rows: finite math, sliced off below
        xf = jnp.pad(xf, ((0, m_pad - M), (0, 0)))
        xrf = jnp.pad(xrf, ((0, m_pad - M), (0, 0)))
    grid = (m_pad // tm,)

    flops = 2 * M * (_HID * seq_len + _HID * raw_len + _CAT * pred_len)
    transcendentals = 0 if mode == 'std' else M * _CAT
    bytes_accessed = (2 * M * (seq_len + raw_len) + 4 * M * pred_len
                      + 2 * (wi.size + wr.size + wo1.size + wo2.size)
                      + 4 * (bi.size + br.size + bo.size))

    out_flat = pl.pallas_call(
        functools.partial(_mlp_kernel, mode=mode),
        out_shape=jax.ShapeDtypeStruct((m_pad, pred_len), jnp.float32),
        grid=grid,
        in_specs=[
            pl.BlockSpec((tm, seq_len), lambda i: (i, 0)),   # x rows (pipelined)
            pl.BlockSpec((tm, raw_len), lambda i: (i, 0)),   # x_raw rows (pipelined)
            _resident_spec((seq_len, _HID), single_buffer_weights),
            _resident_spec((1, _HID), single_buffer_weights),
            _resident_spec((raw_len, _HID), single_buffer_weights),
            _resident_spec((1, _HID), single_buffer_weights),
            _resident_spec((_HID, pred_len), single_buffer_weights),
            _resident_spec((_HID, pred_len), single_buffer_weights),
            _resident_spec((1, pred_len), single_buffer_weights),
        ],
        out_specs=pl.BlockSpec((tm, pred_len), lambda i: (i, 0)),
        compiler_params=pltpu.CompilerParams(
            # TODO(synk): on v7x verify "parallel" shards the row grid across
            # both TensorCores; switch to pltpu.CORE_PARALLEL if it does not.
            dimension_semantics=("parallel",),
            vmem_limit_bytes=int(vmem_limit)),
        cost_estimate=pl.CostEstimate(
            flops=flops, transcendentals=transcendentals,
            bytes_accessed=bytes_accessed),
    )(xf, xrf, wi, bi, wr, br, wo1, wo2, bo)

    out = out_flat[:M].reshape(B, C, pred_len)
    return jnp.transpose(out, (0, 2, 1))


def mlp_reference(x, x_raw, params, mode):
    """Pure-JAX f32 reference mirroring the PyTorch forward."""
    xp = jnp.transpose(x, (0, 2, 1))
    xrp = jnp.transpose(x_raw, (0, 2, 1))
    h1 = xp @ params['w_in'].T + params['b_in']
    h2 = xrp @ params['w_raw'].T + params['b_raw']
    h = jnp.concatenate([h1, h2], axis=-1)
    h = jnp.maximum(h, 0.0) if mode == 'std' else jnp.tanh(h)
    out = h @ params['w_out'].T + params['b_out']
    if mode == 'std':
        out = jnp.maximum(out, 0.0)
    return jnp.transpose(out, (0, 2, 1))


if __name__ == "__main__":
    B, C = 2, 4                               # batch, enc_in
    seq_len, period_len, pred_len = 16, 2, 8

    key = jax.random.PRNGKey(0)
    kx, kxr, kp = jax.random.split(key, 3)
    x = jax.random.normal(kx, (B, seq_len, C), jnp.float32)
    x_raw = jax.random.normal(kxr, (B, seq_len * period_len, C), jnp.float32)
    params = init_mlp_params(kp, seq_len, pred_len, period_len)

    fwd = jax.jit(mlp_forward, static_argnames=("mode", "single_buffer_weights"))

    def run(mode):
        try:
            out = fwd(x, x_raw, params, mode=mode, single_buffer_weights=True)
            return jax.block_until_ready(out)
        except Exception:
            # pl.Buffered(1) not supported by this Pallas/Mosaic build: fall back
            # to default double-buffered resident weights (semantics unchanged).
            out = fwd(x, x_raw, params, mode=mode, single_buffer_weights=False)
            return jax.block_until_ready(out)

    for mode in ("std", "mean"):              # ReLU path and Tanh/Identity path
        out = run(mode)
        ref = mlp_reference(x, x_raw, params, mode)
        assert out.shape == (B, pred_len, C), out.shape
        err = float(jnp.max(jnp.abs(out - ref)))
        # bf16 matmul operands (f32 accumulation) -> loosened tolerance vs f32 ref.
        assert err < 2e-2, f"mode={mode}: max abs err {err}"

    print("KERNEL_OK")
</pallas_src>

<mosaic_0001>
module attributes {stable_mosaic.version = 11 : i64} {
  func.func @_mlp_kernel(%arg0: i32, %arg1: memref<8x16xbf16, #tpu.memory_space<vmem>>, %arg2: memref<8x32xbf16, #tpu.memory_space<vmem>>, %arg3: memref<16x512xbf16, #tpu.memory_space<vmem>>, %arg4: memref<1x512xf32, #tpu.memory_space<vmem>>, %arg5: memref<32x512xbf16, #tpu.memory_space<vmem>>, %arg6: memref<1x512xf32, #tpu.memory_space<vmem>>, %arg7: memref<512x8xbf16, #tpu.memory_space<vmem>>, %arg8: memref<512x8xbf16, #tpu.memory_space<vmem>>, %arg9: memref<1x8xf32, #tpu.memory_space<vmem>>, %arg10: memref<8x8xf32, #tpu.memory_space<vmem>>) attributes {dimension_semantics = [#tpu.dimension_semantics<parallel>], iteration_bounds = array<i64: 2>, scalar_prefetch = 0 : i64, scratch_operands = 0 : i64, tpu.core_type = #tpu.core_type<tc>, window_params = [{transform_indices = @transform_0, window_bounds = array<i64: 8, 16>}, {transform_indices = @transform_1, window_bounds = array<i64: 8, 32>}, {pipeline_mode = #tpu.pipeline_mode<synchronous>, transform_indices = @transform_2, window_bounds = array<i64: 16, 512>}, {pipeline_mode = #tpu.pipeline_mode<synchronous>, transform_indices = @transform_3, window_bounds = array<i64: 1, 512>}, {pipeline_mode = #tpu.pipeline_mode<synchronous>, transform_indices = @transform_4, window_bounds = array<i64: 32, 512>}, {pipeline_mode = #tpu.pipeline_mode<synchronous>, transform_indices = @transform_5, window_bounds = array<i64: 1, 512>}, {pipeline_mode = #tpu.pipeline_mode<synchronous>, transform_indices = @transform_6, window_bounds = array<i64: 512, 8>}, {pipeline_mode = #tpu.pipeline_mode<synchronous>, transform_indices = @transform_7, window_bounds = array<i64: 512, 8>}, {pipeline_mode = #tpu.pipeline_mode<synchronous>, transform_indices = @transform_8, window_bounds = array<i64: 1, 8>}, {transform_indices = @transform_9, window_bounds = array<i64: 8, 8>}]} {
    %c0 = arith.constant 0 : index
    %c0_0 = arith.constant 0 : index
    %0 = vector.load %arg1[%c0, %c0_0] : memref<8x16xbf16, #tpu.memory_space<vmem>>, vector<8x16xbf16>
    %c0_1 = arith.constant 0 : index
    %c0_2 = arith.constant 0 : index
    %1 = vector.load %arg3[%c0_1, %c0_2] : memref<16x512xbf16, #tpu.memory_space<vmem>>, vector<16x512xbf16>
    %cst = arith.constant dense<0.000000e+00> : vector<8x512xf32>
    %2 = tpu.matmul %0, %1, %cst {dimension_numbers = #tpu.dot_dimension_numbers<[1], [0], [0], [1], [0, 0, 1, 1], [], []>} : vector<8x16xbf16>, vector<16x512xbf16>, vector<8x512xf32> -> vector<8x512xf32>
    %c0_3 = arith.constant 0 : index
    %c0_4 = arith.constant 0 : index
    %3 = vector.load %arg4[%c0_3, %c0_4] : memref<1x512xf32, #tpu.memory_space<vmem>>, vector<1x512xf32>
    %4 = vector.broadcast %3 : vector<1x512xf32> to vector<8x512xf32>
    %5 = arith.addf %2, %4 : vector<8x512xf32>
    %c0_5 = arith.constant 0 : index
    %c0_6 = arith.constant 0 : index
    %6 = vector.load %arg2[%c0_5, %c0_6] : memref<8x32xbf16, #tpu.memory_space<vmem>>, vector<8x32xbf16>
    %c0_7 = arith.constant 0 : index
    %c0_8 = arith.constant 0 : index
    %7 = vector.load %arg5[%c0_7, %c0_8] : memref<32x512xbf16, #tpu.memory_space<vmem>>, vector<32x512xbf16>
    %cst_9 = arith.constant dense<0.000000e+00> : vector<8x512xf32>
    %8 = tpu.matmul %6, %7, %cst_9 {dimension_numbers = #tpu.dot_dimension_numbers<[1], [0], [0], [1], [0, 0, 1, 1], [], []>} : vector<8x32xbf16>, vector<32x512xbf16>, vector<8x512xf32> -> vector<8x512xf32>
    %c0_10 = arith.constant 0 : index
    %c0_11 = arith.constant 0 : index
    %9 = vector.load %arg6[%c0_10, %c0_11] : memref<1x512xf32, #tpu.memory_space<vmem>>, vector<1x512xf32>
    %10 = vector.broadcast %9 : vector<1x512xf32> to vector<8x512xf32>
    %11 = arith.addf %8, %10 : vector<8x512xf32>
    %cst_12 = arith.constant 0.000000e+00 : f32
    %12 = vector.broadcast %cst_12 : f32 to vector<8x512xf32>
    %13 = arith.maximumf %5, %12 : vector<8x512xf32>
    %cst_13 = arith.constant 0.000000e+00 : f32
    %14 = vector.broadcast %cst_13 : f32 to vector<8x512xf32>
    %15 = arith.maximumf %11, %14 : vector<8x512xf32>
    %16 = arith.truncf %13 : vector<8x512xf32> to vector<8x512xbf16>
    %c0_14 = arith.constant 0 : index
    %c0_15 = arith.constant 0 : index
    %17 = vector.load %arg7[%c0_14, %c0_15] : memref<512x8xbf16, #tpu.memory_space<vmem>>, vector<512x8xbf16>
    %cst_16 = arith.constant dense<0.000000e+00> : vector<8x8xf32>
    %18 = tpu.matmul %16, %17, %cst_16 {dimension_numbers = #tpu.dot_dimension_numbers<[1], [0], [0], [1], [0, 0, 1, 1], [], []>} : vector<8x512xbf16>, vector<512x8xbf16>, vector<8x8xf32> -> vector<8x8xf32>
    %19 = arith.truncf %15 : vector<8x512xf32> to vector<8x512xbf16>
    %c0_17 = arith.constant 0 : index
    %c0_18 = arith.constant 0 : index
    %20 = vector.load %arg8[%c0_17, %c0_18] : memref<512x8xbf16, #tpu.memory_space<vmem>>, vector<512x8xbf16>
    %cst_19 = arith.constant dense<0.000000e+00> : vector<8x8xf32>
    %21 = tpu.matmul %19, %20, %cst_19 {dimension_numbers = #tpu.dot_dimension_numbers<[1], [0], [0], [1], [0, 0, 1, 1], [], []>} : vector<8x512xbf16>, vector<512x8xbf16>, vector<8x8xf32> -> vector<8x8xf32>
    %22 = arith.addf %18, %21 : vector<8x8xf32>
    %c0_20 = arith.constant 0 : index
    %c0_21 = arith.constant 0 : index
    %23 = vector.load %arg9[%c0_20, %c0_21] : memref<1x8xf32, #tpu.memory_space<vmem>>, vector<1x8xf32>
    %24 = vector.broadcast %23 : vector<1x8xf32> to vector<8x8xf32>
    %25 = arith.addf %22, %24 : vector<8x8xf32>
    %cst_22 = arith.constant 0.000000e+00 : f32
    %26 = vector.broadcast %cst_22 : f32 to vector<8x8xf32>
    %27 = arith.maximumf %25, %26 : vector<8x8xf32>
    %c0_23 = arith.constant 0 : index
    %c0_24 = arith.constant 0 : index
    %28 = vector.load %arg10[%c0_23, %c0_24] : memref<8x8xf32, #tpu.memory_space<vmem>>, vector<8x8xf32>
    tpu.vector_store %arg10[%c0_23, %c0_24], %27 {strides = array<i32>} : memref<8x8xf32, #tpu.memory_space<vmem>>, vector<8x8xf32>,
    return
  }
  func.func @transform_0(%arg0: i32) -> (i32, i32) {
    %c0_i32 = arith.constant 0 : i32
    %c0_i32_0 = arith.constant 0 : i32
    return %arg0, %c0_i32 : i32, i32
  }
  func.func @transform_1(%arg0: i32) -> (i32, i32) {
    %c0_i32 = arith.constant 0 : i32
    %c0_i32_0 = arith.constant 0 : i32
    return %arg0, %c0_i32 : i32, i32
  }
  func.func @transform_2(%arg0: i32) -> (i32, i32) {
    %c0_i32 = arith.constant 0 : i32
    %c0_i32_0 = arith.constant 0 : i32
    %c0_i32_1 = arith.constant 0 : i32
    return %c0_i32, %c0_i32_0 : i32, i32
  }
  func.func @transform_3(%arg0: i32) -> (i32, i32) {
    %c0_i32 = arith.constant 0 : i32
    %c0_i32_0 = arith.constant 0 : i32
    %c0_i32_1 = arith.constant 0 : i32
    return %c0_i32, %c0_i32_0 : i32, i32
  }
  func.func @transform_4(%arg0: i32) -> (i32, i32) {
    %c0_i32 = arith.constant 0 : i32
    %c0_i32_0 = arith.constant 0 : i32
    %c0_i32_1 = arith.constant 0 : i32
    return %c0_i32, %c0_i32_0 : i32, i32
  }
  func.func @transform_5(%arg0: i32) -> (i32, i32) {
    %c0_i32 = arith.constant 0 : i32
    %c0_i32_0 = arith.constant 0 : i32
    %c0_i32_1 = arith.constant 0 : i32
    return %c0_i32, %c0_i32_0 : i32, i32
  }
  func.func @transform_6(%arg0: i32) -> (i32, i32) {
    %c0_i32 = arith.constant 0 : i32
    %c0_i32_0 = arith.constant 0 : i32
    %c0_i32_1 = arith.constant 0 : i32
    return %c0_i32, %c0_i32_0 : i32, i32
  }
  func.func @transform_7(%arg0: i32) -> (i32, i32) {
    %c0_i32 = arith.constant 0 : i32
    %c0_i32_0 = arith.constant 0 : i32
    %c0_i32_1 = arith.constant 0 : i32
    return %c0_i32, %c0_i32_0 : i32, i32
  }
  func.func @transform_8(%arg0: i32) -> (i32, i32) {
    %c0_i32 = arith.constant 0 : i32
    %c0_i32_0 = arith.constant 0 : i32
    %c0_i32_1 = arith.constant 0 : i32
    return %c0_i32, %c0_i32_0 : i32, i32
  }
  func.func @transform_9(%arg0: i32) -> (i32, i32) {
    %c0_i32 = arith.constant 0 : i32
    %c0_i32_0 = arith.constant 0 : i32
    return %arg0, %c0_i32 : i32, i32
  }
}

module attributes {stable_mosaic.version = 11 : i64} {
  func.func @_mlp_kernel(%arg0: i32, %arg1: memref<8x16xbf16, #tpu.memory_space<vmem>>, %arg2: memref<8x32xbf16, #tpu.memory_space<vmem>>, %arg3: memref<16x512xbf16, #tpu.memory_space<vmem>>, %arg4: memref<1x512xf32, #tpu.memory_space<vmem>>, %arg5: memref<32x512xbf16, #tpu.memory_space<vmem>>, %arg6: memref<1x512xf32, #tpu.memory_space<vmem>>, %arg7: memref<512x8xbf16, #tpu.memory_space<vmem>>, %arg8: memref<512x8xbf16, #tpu.memory_space<vmem>>, %arg9: memref<1x8xf32, #tpu.memory_space<vmem>>, %arg10: memref<8x8xf32, #tpu.memory_space<vmem>>) attributes {dimension_semantics = [#tpu.dimension_semantics<parallel>], iteration_bounds = array<i64: 2>, scalar_prefetch = 0 : i64, scratch_operands = 0 : i64, tpu.core_type = #tpu.core_type<tc>, window_params = [{transform_indices = @transform_0, window_bounds = array<i64: 8, 16>}, {transform_indices = @transform_1, window_bounds = array<i64: 8, 32>}, {pipeline_mode = #tpu.pipeline_mode<synchronous>, transform_indices = @transform_2, window_bounds = array<i64: 16, 512>}, {pipeline_mode = #tpu.pipeline_mode<synchronous>, transform_indices = @transform_3, window_bounds = array<i64: 1, 512>}, {pipeline_mode = #tpu.pipeline_mode<synchronous>, transform_indices = @transform_4, window_bounds = array<i64: 32, 512>}, {pipeline_mode = #tpu.pipeline_mode<synchronous>, transform_indices = @transform_5, window_bounds = array<i64: 1, 512>}, {pipeline_mode = #tpu.pipeline_mode<synchronous>, transform_indices = @transform_6, window_bounds = array<i64: 512, 8>}, {pipeline_mode = #tpu.pipeline_mode<synchronous>, transform_indices = @transform_7, window_bounds = array<i64: 512, 8>}, {pipeline_mode = #tpu.pipeline_mode<synchronous>, transform_indices = @transform_8, window_bounds = array<i64: 1, 8>}, {transform_indices = @transform_9, window_bounds = array<i64: 8, 8>}]} {
    %c0 = arith.constant 0 : index
    %c0_0 = arith.constant 0 : index
    %0 = vector.load %arg1[%c0, %c0_0] : memref<8x16xbf16, #tpu.memory_space<vmem>>, vector<8x16xbf16>
    %c0_1 = arith.constant 0 : index
    %c0_2 = arith.constant 0 : index
    %1 = vector.load %arg3[%c0_1, %c0_2] : memref<16x512xbf16, #tpu.memory_space<vmem>>, vector<16x512xbf16>
    %cst = arith.constant dense<0.000000e+00> : vector<8x512xf32>
    %2 = tpu.matmul %0, %1, %cst {dimension_numbers = #tpu.dot_dimension_numbers<[1], [0], [0], [1], [0, 0, 1, 1], [], []>} : vector<8x16xbf16>, vector<16x512xbf16>, vector<8x512xf32> -> vector<8x512xf32>
    %c0_3 = arith.constant 0 : index
    %c0_4 = arith.constant 0 : index
    %3 = vector.load %arg4[%c0_3, %c0_4] : memref<1x512xf32, #tpu.memory_space<vmem>>, vector<1x512xf32>
    %4 = vector.broadcast %3 : vector<1x512xf32> to vector<8x512xf32>
    %5 = arith.addf %2, %4 : vector<8x512xf32>
    %c0_5 = arith.constant 0 : index
    %c0_6 = arith.constant 0 : index
    %6 = vector.load %arg2[%c0_5, %c0_6] : memref<8x32xbf16, #tpu.memory_space<vmem>>, vector<8x32xbf16>
    %c0_7 = arith.constant 0 : index
    %c0_8 = arith.constant 0 : index
    %7 = vector.load %arg5[%c0_7, %c0_8] : memref<32x512xbf16, #tpu.memory_space<vmem>>, vector<32x512xbf16>
    %cst_9 = arith.constant dense<0.000000e+00> : vector<8x512xf32>
    %8 = tpu.matmul %6, %7, %cst_9 {dimension_numbers = #tpu.dot_dimension_numbers<[1], [0], [0], [1], [0, 0, 1, 1], [], []>} : vector<8x32xbf16>, vector<32x512xbf16>, vector<8x512xf32> -> vector<8x512xf32>
    %c0_10 = arith.constant 0 : index
    %c0_11 = arith.constant 0 : index
    %9 = vector.load %arg6[%c0_10, %c0_11] : memref<1x512xf32, #tpu.memory_space<vmem>>, vector<1x512xf32>
    %10 = vector.broadcast %9 : vector<1x512xf32> to vector<8x512xf32>
    %11 = arith.addf %8, %10 : vector<8x512xf32>
    %cst_12 = arith.constant 0.000000e+00 : f32
    %12 = vector.broadcast %cst_12 : f32 to vector<8x512xf32>
    %13 = arith.maximumf %5, %12 : vector<8x512xf32>
    %cst_13 = arith.constant 0.000000e+00 : f32
    %14 = vector.broadcast %cst_13 : f32 to vector<8x512xf32>
    %15 = arith.maximumf %11, %14 : vector<8x512xf32>
    %16 = arith.truncf %13 : vector<8x512xf32> to vector<8x512xbf16>
    %c0_14 = arith.constant 0 : index
    %c0_15 = arith.constant 0 : index
    %17 = vector.load %arg7[%c0_14, %c0_15] : memref<512x8xbf16, #tpu.memory_space<vmem>>, vector<512x8xbf16>
    %cst_16 = arith.constant dense<0.000000e+00> : vector<8x8xf32>
    %18 = tpu.matmul %16, %17, %cst_16 {dimension_numbers = #tpu.dot_dimension_numbers<[1], [0], [0], [1], [0, 0, 1, 1], [], []>} : vector<8x512xbf16>, vector<512x8xbf16>, vector<8x8xf32> -> vector<8x8xf32>
    %19 = arith.truncf %15 : vector<8x512xf32> to vector<8x512xbf16>
    %c0_17 = arith.constant 0 : index
    %c0_18 = arith.constant 0 : index
    %20 = vector.load %arg8[%c0_17, %c0_18] : memref<512x8xbf16, #tpu.memory_space<vmem>>, vector<512x8xbf16>
    %cst_19 = arith.constant dense<0.000000e+00> : vector<8x8xf32>
    %21 = tpu.matmul %19, %20, %cst_19 {dimension_numbers = #tpu.dot_dimension_numbers<[1], [0], [0], [1], [0, 0, 1, 1], [], []>} : vector<8x512xbf16>, vector<512x8xbf16>, vector<8x8xf32> -> vector<8x8xf32>
    %22 = arith.addf %18, %21 : vector<8x8xf32>
    %c0_20 = arith.constant 0 : index
    %c0_21 = arith.constant 0 : index
    %23 = vector.load %arg9[%c0_20, %c0_21] : memref<1x8xf32, #tpu.memory_space<vmem>>, vector<1x8xf32>
    %24 = vector.broadcast %23 : vector<1x8xf32> to vector<8x8xf32>
    %25 = arith.addf %22, %24 : vector<8x8xf32>
    %cst_22 = arith.constant 0.000000e+00 : f32
    %26 = vector.broadcast %cst_22 : f32 to vector<8x8xf32>
    %27 = arith.maximumf %25, %26 : vector<8x8xf32>
    %c0_23 = arith.constant 0 : index
    %c0_24 = arith.constant 0 : index
    %28 = vector.load %arg10[%c0_23, %c0_24] : memref<8x8xf32, #tpu.memory_space<vmem>>, vector<8x8xf32>
    tpu.vector_store %arg10[%c0_23, %c0_24], %27 {strides = array<i32>} : memref<8x8xf32, #tpu.memory_space<vmem>>, vector<8x8xf32>,
    return
  }
  func.func @transform_0(%arg0: i32) -> (i32, i32) {
    %c0_i32 = arith.constant 0 : i32
    %c0_i32_0 = arith.constant 0 : i32
    return %arg0, %c0_i32 : i32, i32
  }
  func.func @transform_1(%arg0: i32) -> (i32, i32) {
    %c0_i32 = arith.constant 0 : i32
    %c0_i32_0 = arith.constant 0 : i32
    return %arg0, %c0_i32 : i32, i32
  }
  func.func @transform_2(%arg0: i32) -> (i32, i32) {
    %c0_i32 = arith.constant 0 : i32
    %c0_i32_0 = arith.constant 0 : i32
    %c0_i32_1 = arith.constant 0 : i32
    return %c0_i32, %c0_i32_0 : i32, i32
  }
  func.func @transform_3(%arg0: i32) -> (i32, i32) {
    %c0_i32 = arith.constant 0 : i32
    %c0_i32_0 = arith.constant 0 : i32
    %c0_i32_1 = arith.constant 0 : i32
    return %c0_i32, %c0_i32_0 : i32, i32
  }
  func.func @transform_4(%arg0: i32) -> (i32, i32) {
    %c0_i32 = arith.constant 0 : i32
    %c0_i32_0 = arith.constant 0 : i32
    %c0_i32_1 = arith.constant 0 : i32
    return %c0_i32, %c0_i32_0 : i32, i32
  }
  func.func @transform_5(%arg0: i32) -> (i32, i32) {
    %c0_i32 = arith.constant 0 : i32
    %c0_i32_0 = arith.constant 0 : i32
    %c0_i32_1 = arith.constant 0 : i32
    return %c0_i32, %c0_i32_0 : i32, i32
  }
  func.func @transform_6(%arg0: i32) -> (i32, i32) {
    %c0_i32 = arith.constant 0 : i32
    %c0_i32_0 = arith.constant 0 : i32
    %c0_i32_1 = arith.constant 0 : i32
    return %c0_i32, %c0_i32_0 : i32, i32
  }
  func.func @transform_7(%arg0: i32) -> (i32, i32) {
    %c0_i32 = arith.constant 0 : i32
    %c0_i32_0 = arith.constant 0 : i32
    %c0_i32_1 = arith.constant 0 : i32
    return %c0_i32, %c0_i32_0 : i32, i32
  }
  func.func @transform_8(%arg0: i32) -> (i32, i32) {
    %c0_i32 = arith.constant 0 : i32
    %c0_i32_0 = arith.constant 0 : i32
    %c0_i32_1 = arith.constant 0 : i32
    return %c0_i32, %c0_i32_0 : i32, i32
  }
  func.func @transform_9(%arg0: i32) -> (i32, i32) {
    %c0_i32 = arith.constant 0 : i32
    %c0_i32_0 = arith.constant 0 : i32
    return %arg0, %c0_i32 : i32, i32
  }
}

</mosaic_0001>

<bundles_post_ra>
// kernel: mlp_forward.1
= control target key start
LH: loop header
LB: loop body
LE: loop exit
PB: predicated region body
PF: predicated region fallthrough
CT: control target
= control target key end

     0   :  { %s1729_s30 = smov 0   ;;  %s2016_s0 = inlined_call_operand.vmem [shape: bf16[16,16], index: 0, kind: input, shape index: {}]   ;;  %s2017_s1 = inlined_call_operand.vmem [shape: bf16[16,32], index: 1, kind: input, shape index: {}]   ;;  %s2018_s2 = inlined_call_operand.vmem [shape: bf16[16,512], index: 2, kind: input, shape index: {}]   ;;  %s2019_s3 = inlined_call_operand.vmem [shape: f32[1,512], index: 3, kind: input, shape index: {}]   ;;  %s2020_s4 = inlined_call_operand.vmem [shape: bf16[32,512], index: 4, kind: input, shape index: {}]   ;;  %s2021_s5 = inlined_call_operand.vmem [shape: f32[1,512], index: 5, kind: input, shape index: {}]   ;;  %s2022_s6 = inlined_call_operand.vmem [shape: bf16[512,8], index: 6, kind: input, shape index: {}]   ;;  %s2023_s7 = inlined_call_operand.vmem [shape: bf16[512,8], index: 7, kind: input, shape index: {}]   ;;  %s2024_s8 = inlined_call_operand.vmem [shape: f32[1,8], index: 8, kind: input, shape index: {}]   ;;  %s2025_s9 = inlined_call_operand.vmem [shape: f32[16,8], index: 9, kind: output, shape index: {}]  }
   0x1 LB: > { %s1400_s10 = sadd.s32 4294967295, %s1676_s30   ;;  %p1404_p0 = scmp.ge.s32.totalorder %s1676_s30, 1  ;;  %s1676_s30 = sphi %s1729_s30, %s19_s30  }
   0x2   : > { %p295_p1 = scmp.lt.s32.totalorder %s1676_s30, 3 }
   0x4   : > { %p296_p2 = pnand %p1404_p0, %p295_p1 }
   0x5   : > { %v1588_v0 = vld [vmem:[%s2018_s2 + $0x4] ss:$16 sps:$4 sm:$0xff] (!%p296_p2)   ;;  %p333_p3 = scmp.lt.s32.totalorder (!%p296_p2), %s1400_s10, 1  ;;  %v1590_v1 = vld [vmem:[%s2018_s2 + $0xc] ss:$16 sps:$4 sm:$0xff] (!%p296_p2)   ;;  %v1678_v2 = vmov (!%p296_p2), 0   ;;  %v353_v49 = vlaneseq (!%p296_p2) }
   0x6   : > { %299 = sbr.rel (%p296_p2) target bundleno = 501 (0x1f5), region = 56  ;;  %429 = vmatprep.mubr.bf16.mxu0 (!%p296_p2), %v1678_v2  ;;  %470 = vmatprep.mubr.bf16.mxu1 (!%p296_p2), %v1678_v2  ;;  %v1592_v3 = vld [vmem:[%s2018_s2] ss:$16 sps:$4 sm:$0xff] (!%p296_p2)   ;;  %v1593_v4 = vld [vmem:[%s2018_s2 + $0x8] ss:$16 sps:$4 sm:$0xff] (!%p296_p2)   ;;  %vm393_vm0 = vcmask (!%p296_p2), 130048  }
   0x7   : > { %397 = vmatprep.subr.bf16.mxu0 (!%p296_p2), %v1588_v0  ;;  %438 = vmatprep.subr.bf16.mxu1 (!%p296_p2), %v1590_v1  ;;  %v1594_v5 = vld [vmem:[%s2020_s4] ss:$16 sps:$4 sm:$0xff] (!%p296_p2)   ;;  %v1596_v6 = vld [vmem:[%s2020_s4 + $0x4] ss:$16 sps:$4 sm:$0xff] (!%p296_p2)   ;;  %v1597_v7 = vld [vmem:[%s2020_s4 + $0x8] ss:$16 sps:$4 sm:$0xff] (!%p296_p2)  }
   0x8   : > { %398 = vmatpush1.bf16.msra.mxu0 (!%p296_p2), %v1592_v3  ;;  %439 = vmatpush1.bf16.msra.mxu1 (!%p296_p2), %v1593_v4  ;;  %v1599_v8 = vld [vmem:[%s2020_s4 + $0xc] ss:$16 sps:$4 sm:$0xff] (!%p296_p2)   ;;  %v1602_v10 = vld [vmem:[%s2020_s4 + $0x24] ss:$16 sps:$4 sm:$0xff] (!%p296_p2)   ;;  %v1600_v11 = vld [vmem:[%s2020_s4 + $0x20] ss:$16 sps:$4 sm:$0xff] (!%p296_p2)  }
   0x9   : > { %554 = vmatprep.subr.bf16.mxu0 (!%p296_p2), %v1596_v6  ;;  %595 = vmatprep.subr.bf16.mxu1 (!%p296_p2), %v1599_v8  ;;  %v1603_v12 = vld [vmem:[%s2020_s4 + $0x28] ss:$16 sps:$4 sm:$0xff] (!%p296_p2)   ;;  %v1605_v13 = vld [vmem:[%s2020_s4 + $0x2c] ss:$16 sps:$4 sm:$0xff] (!%p296_p2)   ;;  %v1606_v14 = vld [vmem:[%s2023_s7 + $0x40] sm:$0xff] (!%p296_p2)   ;;  %vm550_vm1 = vcmask (!%p296_p2), 261120  }
   0xa   : > { %v1607_v16 = vld [vmem:[%s2023_s7 + $0xc0] sm:$0xff] (!%p296_p2)   ;;  %v1610_v19 = vld [vmem:[%s2023_s7 + $0x48] sm:$0xff] (!%p296_p2)   ;;  %v1614_v23 = vld [vmem:[%s2023_s7 + $0x50] sm:$0xff] (!%p296_p2)   ;;  %v1884_v50 = vshrl.u32 (!%p296_p2), %v353_v49, 7  ;;  %vm1333_vm2 = vcmask (!%p296_p2), 64512  }
   0xb   : > { %v1608_v17 = vld [vmem:[%s2023_s7] sm:$0xff] (!%p296_p2)   ;;  %v1611_v20 = vld [vmem:[%s2023_s7 + $0xc8] sm:$0xff] (!%p296_p2)   ;;  %v1615_v24 = vld [vmem:[%s2023_s7 + $0xd0] sm:$0xff] (!%p296_p2)  }
   0xc   : > { %v1609_v18 = vld [vmem:[%s2023_s7 + $0x80] sm:$0xff] (!%p296_p2)   ;;  %v1612_v21 = vld [vmem:[%s2023_s7 + $0x8] sm:$0xff] (!%p296_p2)   ;;  %v1616_v25 = vld [vmem:[%s2023_s7 + $0x10] sm:$0xff] (!%p296_p2)   ;;  %v359_v54 = vsub.s32 (!%p296_p2), 1, %v1884_v50  ;;  %v367_v57 = vsub.s32 (!%p296_p2), 3, %v1884_v50  ;;  %v355_v61 = vsub.s32 (!%p296_p2), 0, %v1884_v50 }
   0xd   : > { %s2027_s10 = smov (!%p333_p3, %s1400_s10), 1  ;;  %v1613_v22 = vld [vmem:[%s2023_s7 + $0x88] sm:$0xff]   ;;  %v1617_v26 = vld [vmem:[%s2023_s7 + $0x90] sm:$0xff]   ;;  %v1618_v27 = vld [vmem:[%s2023_s7 + $0x58] sm:$0xff]   ;;  %v363_v0 = vsub.s32 2, %v1884_v50 }
   0xe   : > { %s1405_s23 = sshll.u32 %s2027_s10, 2  ;;  %v1619_v28 = vld [vmem:[%s2023_s7 + $0xd8] sm:$0xff]   ;;  %v1622_v31 = vld [vmem:[%s2023_s7 + $0x60] sm:$0xff]   ;;  %v1626_v35 = vld [vmem:[%s2023_s7 + $0x68] sm:$0xff]  }
   0xf   : > { %s336_s28 = scalar_lea.vmem %s2016_s0, %s1405_s23  ;;  %s340_s16 = scalar_lea.vmem %s2017_s1, %s1405_s23  ;;  %v1620_v29 = vld [vmem:[%s2023_s7 + $0x18] sm:$0xff]   ;;  %v1623_v32 = vld [vmem:[%s2023_s7 + $0xe0] sm:$0xff]   ;;  %v1627_v36 = vld [vmem:[%s2023_s7 + $0xe8] sm:$0xff]  }
  0x10   : > { %v346_v9 = vld [vmem:[%s336_s28] sm:$0xf]  ;;  %v1621_v30 = vld [vmem:[%s2023_s7 + $0x98] sm:$0xff]   ;;  %v1628_v37 = vld [vmem:[%s2023_s7 + $0x28] sm:$0xff]   ;;  %s1407_s23 = sshll.u32 %s2027_s10, 3 }
  0x11   : > { %1412 = vmatmul.mubr.msk.bf16.vlgmr.msra.gmra.mrb[0].mxu0 %vm393_vm0, %v346_v9  ;;  %1413 = vmatmul.mubr.msk.bf16.vlgmr.msra.gmra.mrb[0].mxu1 %vm393_vm0, %v346_v9  ;;  %v479_v15 = vld [vmem:[%s340_s16] sm:$0xf]  ;;  %v1629_v38 = vld [vmem:[%s2023_s7 + $0xa8] sm:$0xff]   ;;  %v1630_v39 = vld [vmem:[%s2023_s7 + $0x70] sm:$0xff]   ;;  %s344_s27 = scalar_lea.vmem %s2025_s9, %s1407_s23 }
  0x12   : > { %555 = vmatpush1.bf16.msra.mxu0 %v1594_v5  ;;  %596 = vmatpush1.bf16.msra.mxu1 %v1597_v7  ;;  %v1624_v33 = vld [vmem:[%s2023_s7 + $0x20] sm:$0xff]   ;;  %v1631_v40 = vld [vmem:[%s2023_s7 + $0xf0] sm:$0xff]   ;;  %v1634_v43 = vld [vmem:[%s2023_s7 + $0x78] sm:$0xff]  }
  0x13   : > { %556 = vmatprep.subr.bf16.mxu0 %v1602_v10  ;;  %597 = vmatprep.subr.bf16.mxu1 %v1605_v13  ;;  %v1625_v34 = vld [vmem:[%s2023_s7 + $0xa0] sm:$0xff]   ;;  %v1632_v41 = vld [vmem:[%s2023_s7 + $0x30] sm:$0xff]   ;;  %v1635_v44 = vld [vmem:[%s2023_s7 + $0xf8] sm:$0xff]  }
  0x14   : > { %586 = vmatprep.mubr.bf16.mxu0 %v1678_v2  ;;  %627 = vmatprep.mubr.bf16.mxu1 %v1678_v2  ;;  %v1633_v42 = vld [vmem:[%s2023_s7 + $0xb0] sm:$0xff]   ;;  %v1636_v45 = vld [vmem:[%s2023_s7 + $0x38] sm:$0xff]   ;;  %v1638_v47 = vld [vmem:[%s2022_s6 + $0x40] sm:$0xff]  }
  0x15   : > { %v1637_v46 = vld [vmem:[%s2023_s7 + $0xb8] sm:$0xff]   ;;  %v1639_v48 = vld [vmem:[%s2022_s6 + $0xc0] sm:$0xff]   ;;  %v1665_v50 = vld [vmem:[%s2022_s6 + $0xb0] sm:$0xff]  }
  0x16   : > { %557 = vmatpush1.bf16.msra.mxu0 %v1600_v11  ;;  %598 = vmatpush1.bf16.msra.mxu1 %v1603_v12  ;;  %v1893_v53 = vld [vmem:[%s2019_s3] sm:$0xf] }
  0x17   : > { %1491 = vmatprep.subr.bf16.mxu0 %v1606_v14  ;;  %1513 = vmatprep.subr.bf16.mxu1 %v1607_v16  ;;  %v488_v60 = vld [vmem:[%s2021_s5] sm:$0xf]  ;;  %v360_v1 = vrot.slane %v1893_v53, %v359_v54  ;;  %v368_v3 = vrot.slane %v1893_v53, %v367_v57 }
  0x18   : > { %v493_v2 = vrot.slane %v488_v60, %v355_v61  ;;  %v501_v4 = vrot.slane %v488_v60, %v363_v0  ;;  %v497_v5 = vrot.slane %v488_v60, %v359_v54  ;;  %v505_v6 = vrot.slane %v488_v60, %v367_v57  ;;  %v1656_v49 = vld [vmem:[%s2022_s6 + $0x20] sm:$0xff]   ;;  %v1660_v57 = vld [vmem:[%s2022_s6 + $0x28] sm:$0xff]   ;;  %v1662_v60 = vld [vmem:[%s2022_s6 + $0x70] sm:$0xff]  }
  0x19   : > { %1422 = vmatmul.mubr.msk.bf16.vlgmr.msra.gmra.mrb[4].mxu0 %vm550_vm1, %v479_v15  ;;  %1423 = vmatmul.mubr.msk.bf16.vlgmr.msra.gmra.mrb[4].mxu1 %vm550_vm1, %v479_v15  ;;  %v1657_v54 = vld [vmem:[%s2022_s6 + $0xa0] sm:$0xff]  }
  0x1a   : > { %1492 = vmatpush3.bf16.msra.mxu0 %v1608_v17  ;;  %1514 = vmatpush3.bf16.msra.mxu1 %v1609_v18 }
  0x1b   : > { %1493 = vmatprep.subr.bf16.mxu0 %v1610_v19  ;;  %1515 = vmatprep.subr.bf16.mxu1 %v1611_v20 }
  0x1e   : > { %1494 = vmatpush3.bf16.msra.mxu0 %v1612_v21  ;;  %1516 = vmatpush3.bf16.msra.mxu1 %v1613_v22 }
  0x1f   : > { %1495 = vmatprep.subr.bf16.mxu0 %v1614_v23  ;;  %1517 = vmatprep.subr.bf16.mxu1 %v1615_v24 }
  0x22   : > { %1496 = vmatpush3.bf16.msra.mxu0 %v1616_v25  ;;  %1518 = vmatpush3.bf16.msra.mxu1 %v1617_v26 }
  0x23   : > { %1497 = vmatprep.subr.bf16.mxu0 %v1618_v27  ;;  %1519 = vmatprep.subr.bf16.mxu1 %v1619_v28 }
  0x26   : > { %1498 = vmatpush3.bf16.msra.mxu0 %v1620_v29  ;;  %1520 = vmatpush3.bf16.msra.mxu1 %v1621_v30  ;;  %v1640_v29 = vld [vmem:[%s2022_s6] sm:$0xff]  }
  0x27   : > { %1499 = vmatprep.subr.bf16.mxu0 %v1622_v31  ;;  %1521 = vmatprep.subr.bf16.mxu1 %v1623_v32  ;;  %v1641_v32 = vld [vmem:[%s2022_s6 + $0x80] sm:$0xff]  }
  0x2a   : > { %1500 = vmatpush3.bf16.msra.mxu0 %v1624_v33  ;;  %1522 = vmatpush3.bf16.msra.mxu1 %v1625_v34  ;;  %v1642_v33 = vld [vmem:[%s2022_s6 + $0x48] sm:$0xff]  }
  0x2b   : > { %1501 = vmatprep.subr.bf16.mxu0 %v1626_v35  ;;  %1523 = vmatprep.subr.bf16.mxu1 %v1627_v36  ;;  %v1643_v35 = vld [vmem:[%s2022_s6 + $0xc8] sm:$0xff]  }
  0x2e   : > { %1502 = vmatpush3.bf16.msra.mxu0 %v1628_v37  ;;  %1524 = vmatpush3.bf16.msra.mxu1 %v1629_v38  ;;  %v1644_v37 = vld [vmem:[%s2022_s6 + $0x8] sm:$0xff]  }
  0x2f   : > { %1503 = vmatprep.subr.bf16.mxu0 %v1630_v39  ;;  %1525 = vmatprep.subr.bf16.mxu1 %v1631_v40  ;;  %v1645_v38 = vld [vmem:[%s2022_s6 + $0x88] sm:$0xff]   ;;  %v1646_v39 = vld [vmem:[%s2022_s6 + $0x50] sm:$0xff]  }
  0x30   : > { %v1647_v40 = vld [vmem:[%s2022_s6 + $0xd0] sm:$0xff]  }
  0x32   : > { %1504 = vmatpush3.bf16.msra.mxu0 %v1632_v41  ;;  %1526 = vmatpush3.bf16.msra.mxu1 %v1633_v42  ;;  %v1648_v41 = vld [vmem:[%s2022_s6 + $0x10] sm:$0xff]  }
  0x33   : > { %1505 = vmatprep.subr.bf16.mxu0 %v1634_v43  ;;  %1527 = vmatprep.subr.bf16.mxu1 %v1635_v44  ;;  %v1649_v42 = vld [vmem:[%s2022_s6 + $0x90] sm:$0xff]   ;;  %v1650_v43 = vld [vmem:[%s2022_s6 + $0x58] sm:$0xff]  }
  0x34   : > { %v1651_v44 = vld [vmem:[%s2022_s6 + $0xd8] sm:$0xff]  }
  0x36   : > { %1506 = vmatpush3.bf16.msra.mxu0 %v1636_v45  ;;  %1528 = vmatpush3.bf16.msra.mxu1 %v1637_v46  ;;  %v1652_v45 = vld [vmem:[%s2022_s6 + $0x18] sm:$0xff]  }
  0x37   : > { %1535 = vmatprep.subr.bf16.mxu0 %v1638_v47  ;;  %1557 = vmatprep.subr.bf16.mxu1 %v1639_v48  ;;  %v1653_v46 = vld [vmem:[%s2022_s6 + $0x98] sm:$0xff]   ;;  %v1654_v47 = vld [vmem:[%s2022_s6 + $0x60] sm:$0xff]  }
  0x38   : > { %v1655_v48 = vld [vmem:[%s2022_s6 + $0xe0] sm:$0xff]  }
  0xe4   : > { %v1886_v51 = vpop.f32.mrb[0].mxu0  ;;  %v1888_v52 = vpop.f32.mrb[0].mxu1 }
  0xe5   : > { %v433_v55 = vpop.f32.mrb[1].mxu0  ;;  %v474_v56 = vpop.f32.mrb[1].mxu1 }
  0xe6   : > { %v435_v58 = vpop.f32.mrb[2].mxu0  ;;  %v476_v59 = vpop.f32.mrb[2].mxu1  ;;  %v434_v8 = vadd.f32 %v433_v55, %v360_v1  ;;  %v475_v12 = vadd.f32 %v474_v56, %v368_v3  ;;  %v1658_v55 = vld [vmem:[%s2022_s6 + $0x68] sm:$0xff]  }
  0xe7   : > { %v436_v62 = vpop.f32.mrb[3].mxu0  ;;  %v477_v63 = vpop.f32.mrb[3].mxu1  ;;  %v1659_v56 = vld [vmem:[%s2022_s6 + $0xe8] sm:$0xff]   ;;  %v356_v58 = vrot.slane %v1893_v53, %v355_v61  ;;  %v1664_v61 = vld [vmem:[%s2022_s6 + $0x30] sm:$0xff]  }
  0xe8   : > { %v637_v24 = vmax.f32 %v434_v8, 0.0  ;;  %v639_v26 = vmax.f32 %v475_v12, 0.0  ;;  %v1661_v59 = vld [vmem:[%s2022_s6 + $0xa8] sm:$0xff]   ;;  %v364_v62 = vrot.slane %v1893_v53, %v363_v0  ;;  %v1663_v63 = vld [vmem:[%s2022_s6 + $0xf0] sm:$0xff]   ;;  %v1666_v53 = vld [vmem:[%s2022_s6 + $0x78] sm:$0xff]  }
  0xe9   : > { %v432_v1 = vadd.f32 %v1886_v51, %v356_v58  ;;  %v1668_v51 = vld [vmem:[%s2022_s6 + $0x38] sm:$0xff]  }
  0xea   : > { %v645_v34 = vpack.c.bf16 %v637_v24, %v637_v24  ;;  %v647_v36 = vpack.c.bf16 %v639_v26, %v639_v26  ;;  %v473_v0 = vadd.f32 %v1888_v52, %v364_v62 }
  0xeb   : > { %v636_v3 = vmax.f32 %v432_v1, 0.0 }
  0xec   : > { %v588_v7 = vpop.f32.mrb[4].mxu0  ;;  %v629_v10 = vpop.f32.mrb[4].mxu1 }
  0xed   : > { %v589_v9 = vadd.f32 %v588_v7, %v493_v2  ;;  %v590_v11 = vpop.f32.mrb[5].mxu0  ;;  %v630_v13 = vadd.f32 %v629_v10, %v501_v4  ;;  %v631_v15 = vpop.f32.mrb[5].mxu1  ;;  %v1667_v2 = vld [vmem:[%s2022_s6 + $0xf8] sm:$0xff]   ;;  %v644_v52 = vpack.c.bf16 %v636_v3, %v636_v3 }
  0xee   : > { %v591_v14 = vadd.f32 %v590_v11, %v497_v5  ;;  %v592_v16 = vpop.f32.mrb[6].mxu0  ;;  %v632_v18 = vadd.f32 %v631_v15, %v505_v6  ;;  %v633_v19 = vpop.f32.mrb[6].mxu1  ;;  %v1669_v4 = vld [vmem:[%s2022_s6 + $0xb8] sm:$0xff]   ;;  %v638_v5 = vmax.f32 %v473_v0, 0.0 }
  0xef   : > { %v640_v17 = vmax.f32 %v589_v9, 0.0  ;;  %v593_v20 = vpop.f32.mrb[7].mxu0  ;;  %v642_v21 = vmax.f32 %v630_v13, 0.0  ;;  %v634_v23 = vpop.f32.mrb[7].mxu1 }
  0xf0   : > { %v641_v22 = vmax.f32 %v591_v14, 0.0  ;;  %v643_v25 = vmax.f32 %v632_v18, 0.0  ;;  %v646_v6 = vpack.c.bf16 %v638_v5, %v638_v5 }
  0xf1   : > { %v714_v27 = vpack.c.bf16 %v642_v21, %v642_v21  ;;  %v712_v30 = vpack.c.bf16 %v640_v17, %v640_v17 }
  0xf2   : > { %v713_v28 = vpack.c.bf16 %v641_v22, %v641_v22  ;;  %v715_v31 = vpack.c.bf16 %v643_v25, %v643_v25 }
  0xf4   : > { %1004 = vmatprep.mubr.bf16.mxu0 %v713_v28  ;;  %1044 = vmatprep.mubr.bf16.mxu1 %v715_v31 }
  0xf5   : > { %1005 = vmatmul.mubr.bf16.vlgmr.msra.gmra.mrb[8].mxu0 %v712_v30  ;;  %1045 = vmatmul.mubr.bf16.vlgmr.msra.gmra.mrb[8].mxu1 %v714_v27 }
  0xf6   : > { %1536 = vmatpush3.bf16.msra.mxu0 %v1640_v29  ;;  %1558 = vmatpush3.bf16.msra.mxu1 %v1641_v32  ;;  %v1488_v29 = vld [vmem:[%s2024_s8] ss:$0 sm:$0xff] }
  0xf7   : > { %1276 = vmatprep.mubr.bf16.mxu0 %v645_v34  ;;  %1316 = vmatprep.mubr.bf16.mxu1 %v647_v36 }
  0xf8   : > { %1537 = vmatprep.subr.bf16.mxu0 %v1642_v33  ;;  %1559 = vmatprep.subr.bf16.mxu1 %v1643_v35 }
  0xfa   : > { %1538 = vmatpush3.bf16.msra.mxu0 %v1644_v37  ;;  %1560 = vmatpush3.bf16.msra.mxu1 %v1645_v38 }
  0xfb   : > { %1539 = vmatprep.subr.bf16.mxu0 %v1646_v39  ;;  %1561 = vmatprep.subr.bf16.mxu1 %v1647_v40 }
  0xfe   : > { %1540 = vmatpush3.bf16.msra.mxu0 %v1648_v41  ;;  %1562 = vmatpush3.bf16.msra.mxu1 %v1649_v42 }
  0xff   : > { %1541 = vmatprep.subr.bf16.mxu0 %v1650_v43  ;;  %1563 = vmatprep.subr.bf16.mxu1 %v1651_v44 }
 0x102   : > { %1542 = vmatpush3.bf16.msra.mxu0 %v1652_v45  ;;  %1564 = vmatpush3.bf16.msra.mxu1 %v1653_v46 }
 0x103   : > { %1543 = vmatprep.subr.bf16.mxu0 %v1654_v47  ;;  %1565 = vmatprep.subr.bf16.mxu1 %v1655_v48 }
 0x106   : > { %1544 = vmatpush3.bf16.msra.mxu0 %v1656_v49  ;;  %1566 = vmatpush3.bf16.msra.mxu1 %v1657_v54 }
 0x107   : > { %1545 = vmatprep.subr.bf16.mxu0 %v1658_v55  ;;  %1567 = vmatprep.subr.bf16.mxu1 %v1659_v56 }
 0x10a   : > { %1546 = vmatpush3.bf16.msra.mxu0 %v1660_v57  ;;  %1568 = vmatpush3.bf16.msra.mxu1 %v1661_v59 }
 0x10b   : > { %1547 = vmatprep.subr.bf16.mxu0 %v1662_v60  ;;  %1569 = vmatprep.subr.bf16.mxu1 %v1663_v63 }
 0x10e   : > { %1548 = vmatpush3.bf16.msra.mxu0 %v1664_v61  ;;  %1570 = vmatpush3.bf16.msra.mxu1 %v1665_v50 }
 0x10f   : > { %1549 = vmatprep.subr.bf16.mxu0 %v1666_v53  ;;  %1571 = vmatprep.subr.bf16.mxu1 %v1667_v2 }
 0x112   : > { %1550 = vmatpush3.bf16.msra.mxu0 %v1668_v51  ;;  %1572 = vmatpush3.bf16.msra.mxu1 %v1669_v4 }
 0x115   : > { %1277 = vmatmul.mubr.bf16.vlgmr.msra.gmra.mrb[12].mxu0 %v644_v52  ;;  %1317 = vmatmul.mubr.bf16.vlgmr.msra.gmra.mrb[12].mxu1 %v646_v6 }
 0x1c8   : > { %v1507_v7 = vpop.f32.mrb[8].mxu0  ;;  %v1529_v8 = vpop.f32.mrb[8].mxu1 }
 0x1c9   : > { %v1508_v9 = vpop.f32.mrb[9].mxu0  ;;  %v1530_v11 = vpop.f32.mrb[9].mxu1 }
 0x1ca   : > { %v1509_v10 = vadd.f32 %v1508_v9, %v1507_v7  ;;  %v1510_v12 = vpop.f32.mrb[10].mxu0  ;;  %v1531_v13 = vadd.f32 %v1530_v11, %v1529_v8  ;;  %v1532_v14 = vpop.f32.mrb[10].mxu1 }
 0x1cb   : > { %v1511_v15 = vpop.f32.mrb[11].mxu0  ;;  %v1533_v16 = vpop.f32.mrb[11].mxu1 }
 0x1cc   : > { %v1047_v17 = vadd.f32 %v1531_v13, %v1509_v10 }
 0x1e8   : > { %v1551_v18 = vpop.f32.mrb[12].mxu0  ;;  %v1573_v19 = vpop.f32.mrb[12].mxu1 }
 0x1e9   : > { %v1552_v20 = vpop.f32.mrb[13].mxu0  ;;  %v1574_v22 = vpop.f32.mrb[13].mxu1 }
 0x1ea   : > { %v1553_v21 = vadd.f32 %v1552_v20, %v1551_v18  ;;  %v1554_v23 = vpop.f32.mrb[14].mxu0  ;;  %v1575_v24 = vadd.f32 %v1574_v22, %v1573_v19  ;;  %v1576_v25 = vpop.f32.mrb[14].mxu1 }
 0x1eb   : > { %v1555_v26 = vpop.f32.mrb[15].mxu0  ;;  %v1577_v28 = vpop.f32.mrb[15].mxu1 }
 0x1ec   : > { %v1279_v27 = vadd.f32 %v1553_v21, %v1047_v17 }
 0x1ee   : > { %v1319_v30 = vadd.f32 %v1575_v24, %v1279_v27 }
 0x1f0   : > { %v1331_v31 = vadd.f32 %v1488_v29, %v1319_v30 }
 0x1f2   : > { %v1332_v32 = vmax.f32 %v1331_v31, 0.0 }
 0x1f4   : > { %1334 = vst.msk [vmem:[%s344_s27] sm:$0xff] %vm1333_vm2, %v1332_v32 }
 0x1f5 PF: > { %s19_s30 = sadd.s32 1, %s1676_s30  }
 0x1f6   : > { %p16_p4 = scmp.ge.s32.totalorder %s19_s30, 4  }
 0x1f8   :  { %18 = sbr.rel (!%p16_p4) target bundleno = 1 (0x1), region = 89 }

// kernel: mlp_forward.1
= control target key start
LH: loop header
LB: loop body
LE: loop exit
PB: predicated region body
PF: predicated region fallthrough
CT: control target
= control target key end

     0   :  { %s1729_s30 = smov 0   ;;  %s2016_s0 = inlined_call_operand.vmem [shape: bf16[16,16], index: 0, kind: input, shape index: {}]   ;;  %s2017_s1 = inlined_call_operand.vmem [shape: bf16[16,32], index: 1, kind: input, shape index: {}]   ;;  %s2018_s2 = inlined_call_operand.vmem [shape: bf16[16,512], index: 2, kind: input, shape index: {}]   ;;  %s2019_s3 = inlined_call_operand.vmem [shape: f32[1,512], index: 3, kind: input, shape index: {}]   ;;  %s2020_s4 = inlined_call_operand.vmem [shape: bf16[32,512], index: 4, kind: input, shape index: {}]   ;;  %s2021_s5 = inlined_call_operand.vmem [shape: f32[1,512], index: 5, kind: input, shape index: {}]   ;;  %s2022_s6 = inlined_call_operand.vmem [shape: bf16[512,8], index: 6, kind: input, shape index: {}]   ;;  %s2023_s7 = inlined_call_operand.vmem [shape: bf16[512,8], index: 7, kind: input, shape index: {}]   ;;  %s2024_s8 = inlined_call_operand.vmem [shape: f32[1,8], index: 8, kind: input, shape index: {}]   ;;  %s2025_s9 = inlined_call_operand.vmem [shape: f32[16,8], index: 9, kind: output, shape index: {}]  }
   0x1 LB: > { %s1400_s10 = sadd.s32 4294967295, %s1676_s30   ;;  %p1404_p0 = scmp.ge.s32.totalorder %s1676_s30, 1  ;;  %s1676_s30 = sphi %s1729_s30, %s19_s30  }
   0x2   : > { %p295_p1 = scmp.lt.s32.totalorder %s1676_s30, 3 }
   0x4   : > { %p296_p2 = pnand %p1404_p0, %p295_p1 }
   0x5   : > { %v1588_v0 = vld [vmem:[%s2018_s2 + $0x4] ss:$16 sps:$4 sm:$0xff] (!%p296_p2)   ;;  %p333_p3 = scmp.lt.s32.totalorder (!%p296_p2), %s1400_s10, 1  ;;  %v1590_v1 = vld [vmem:[%s2018_s2 + $0xc] ss:$16 sps:$4 sm:$0xff] (!%p296_p2)   ;;  %v1678_v2 = vmov (!%p296_p2), 0   ;;  %v353_v49 = vlaneseq (!%p296_p2) }
   0x6   : > { %299 = sbr.rel (%p296_p2) target bundleno = 501 (0x1f5), region = 56  ;;  %429 = vmatprep.mubr.bf16.mxu0 (!%p296_p2), %v1678_v2  ;;  %470 = vmatprep.mubr.bf16.mxu1 (!%p296_p2), %v1678_v2  ;;  %v1592_v3 = vld [vmem:[%s2018_s2] ss:$16 sps:$4 sm:$0xff] (!%p296_p2)   ;;  %v1593_v4 = vld [vmem:[%s2018_s2 + $0x8] ss:$16 sps:$4 sm:$0xff] (!%p296_p2)   ;;  %vm393_vm0 = vcmask (!%p296_p2), 130048  }
   0x7   : > { %397 = vmatprep.subr.bf16.mxu0 (!%p296_p2), %v1588_v0  ;;  %438 = vmatprep.subr.bf16.mxu1 (!%p296_p2), %v1590_v1  ;;  %v1594_v5 = vld [vmem:[%s2020_s4] ss:$16 sps:$4 sm:$0xff] (!%p296_p2)   ;;  %v1596_v6 = vld [vmem:[%s2020_s4 + $0x4] ss:$16 sps:$4 sm:$0xff] (!%p296_p2)   ;;  %v1597_v7 = vld [vmem:[%s2020_s4 + $0x8] ss:$16 sps:$4 sm:$0xff] (!%p296_p2)  }
   0x8   : > { %398 = vmatpush1.bf16.msra.mxu0 (!%p296_p2), %v1592_v3  ;;  %439 = vmatpush1.bf16.msra.mxu1 (!%p296_p2), %v1593_v4  ;;  %v1599_v8 = vld [vmem:[%s2020_s4 + $0xc] ss:$16 sps:$4 sm:$0xff] (!%p296_p2)   ;;  %v1602_v10 = vld [vmem:[%s2020_s4 + $0x24] ss:$16 sps:$4 sm:$0xff] (!%p296_p2)   ;;  %v1600_v11 = vld [vmem:[%s2020_s4 + $0x20] ss:$16 sps:$4 sm:$0xff] (!%p296_p2)  }
   0x9   : > { %554 = vmatprep.subr.bf16.mxu0 (!%p296_p2), %v1596_v6  ;;  %595 = vmatprep.subr.bf16.mxu1 (!%p296_p2), %v1599_v8  ;;  %v1603_v12 = vld [vmem:[%s2020_s4 + $0x28] ss:$16 sps:$4 sm:$0xff] (!%p296_p2)   ;;  %v1605_v13 = vld [vmem:[%s2020_s4 + $0x2c] ss:$16 sps:$4 sm:$0xff] (!%p296_p2)   ;;  %v1606_v14 = vld [vmem:[%s2023_s7 + $0x40] sm:$0xff] (!%p296_p2)   ;;  %vm550_vm1 = vcmask (!%p296_p2), 261120  }
   0xa   : > { %v1607_v16 = vld [vmem:[%s2023_s7 + $0xc0] sm:$0xff] (!%p296_p2)   ;;  %v1610_v19 = vld [vmem:[%s2023_s7 + $0x48] sm:$0xff] (!%p296_p2)   ;;  %v1614_v23 = vld [vmem:[%s2023_s7 + $0x50] sm:$0xff] (!%p296_p2)   ;;  %v1884_v50 = vshrl.u32 (!%p296_p2), %v353_v49, 7  ;;  %vm1333_vm2 = vcmask (!%p296_p2), 64512  }
   0xb   : > { %v1608_v17 = vld [vmem:[%s2023_s7] sm:$0xff] (!%p296_p2)   ;;  %v1611_v20 = vld [vmem:[%s2023_s7 + $0xc8] sm:$0xff] (!%p296_p2)   ;;  %v1615_v24 = vld [vmem:[%s2023_s7 + $0xd0] sm:$0xff] (!%p296_p2)  }
   0xc   : > { %v1609_v18 = vld [vmem:[%s2023_s7 + $0x80] sm:$0xff] (!%p296_p2)   ;;  %v1612_v21 = vld [vmem:[%s2023_s7 + $0x8] sm:$0xff] (!%p296_p2)   ;;  %v1616_v25 = vld [vmem:[%s2023_s7 + $0x10] sm:$0xff] (!%p296_p2)   ;;  %v359_v54 = vsub.s32 (!%p296_p2), 1, %v1884_v50  ;;  %v367_v57 = vsub.s32 (!%p296_p2), 3, %v1884_v50  ;;  %v355_v61 = vsub.s32 (!%p296_p2), 0, %v1884_v50 }
   0xd   : > { %s2027_s10 = smov (!%p333_p3, %s1400_s10), 1  ;;  %v1613_v22 = vld [vmem:[%s2023_s7 + $0x88] sm:$0xff]   ;;  %v1617_v26 = vld [vmem:[%s2023_s7 + $0x90] sm:$0xff]   ;;  %v1618_v27 = vld [vmem:[%s2023_s7 + $0x58] sm:$0xff]   ;;  %v363_v0 = vsub.s32 2, %v1884_v50 }
   0xe   : > { %s1405_s23 = sshll.u32 %s2027_s10, 2  ;;  %v1619_v28 = vld [vmem:[%s2023_s7 + $0xd8] sm:$0xff]   ;;  %v1622_v31 = vld [vmem:[%s2023_s7 + $0x60] sm:$0xff]   ;;  %v1626_v35 = vld [vmem:[%s2023_s7 + $0x68] sm:$0xff]  }
   0xf   : > { %s336_s28 = scalar_lea.vmem %s2016_s0, %s1405_s23  ;;  %s340_s16 = scalar_lea.vmem %s2017_s1, %s1405_s23  ;;  %v1620_v29 = vld [vmem:[%s2023_s7 + $0x18] sm:$0xff]   ;;  %v1623_v32 = vld [vmem:[%s2023_s7 + $0xe0] sm:$0xff]   ;;  %v1627_v36 = vld [vmem:[%s2023_s7 + $0xe8] sm:$0xff]  }
  0x10   : > { %v346_v9 = vld [vmem:[%s336_s28] sm:$0xf]  ;;  %v1621_v30 = vld [vmem:[%s2023_s7 + $0x98] sm:$0xff]   ;;  %v1628_v37 = vld [vmem:[%s2023_s7 + $0x28] sm:$0xff]   ;;  %s1407_s23 = sshll.u32 %s2027_s10, 3 }
  0x11   : > { %1412 = vmatmul.mubr.msk.bf16.vlgmr.msra.gmra.mrb[0].mxu0 %vm393_vm0, %v346_v9  ;;  %1413 = vmatmul.mubr.msk.bf16.vlgmr.msra.gmra.mrb[0].mxu1 %vm393_vm0, %v346_v9  ;;  %v479_v15 = vld [vmem:[%s340_s16] sm:$0xf]  ;;  %v1629_v38 = vld [vmem:[%s2023_s7 + $0xa8] sm:$0xff]   ;;  %v1630_v39 = vld [vmem:[%s2023_s7 + $0x70] sm:$0xff]   ;;  %s344_s27 = scalar_lea.vmem %s2025_s9, %s1407_s23 }
  0x12   : > { %555 = vmatpush1.bf16.msra.mxu0 %v1594_v5  ;;  %596 = vmatpush1.bf16.msra.mxu1 %v1597_v7  ;;  %v1624_v33 = vld [vmem:[%s2023_s7 + $0x20] sm:$0xff]   ;;  %v1631_v40 = vld [vmem:[%s2023_s7 + $0xf0] sm:$0xff]   ;;  %v1634_v43 = vld [vmem:[%s2023_s7 + $0x78] sm:$0xff]  }
  0x13   : > { %556 = vmatprep.subr.bf16.mxu0 %v1602_v10  ;;  %597 = vmatprep.subr.bf16.mxu1 %v1605_v13  ;;  %v1625_v34 = vld [vmem:[%s2023_s7 + $0xa0] sm:$0xff]   ;;  %v1632_v41 = vld [vmem:[%s2023_s7 + $0x30] sm:$0xff]   ;;  %v1635_v44 = vld [vmem:[%s2023_s7 + $0xf8] sm:$0xff]  }
  0x14   : > { %586 = vmatprep.mubr.bf16.mxu0 %v1678_v2  ;;  %627 = vmatprep.mubr.bf16.mxu1 %v1678_v2  ;;  %v1633_v42 = vld [vmem:[%s2023_s7 + $0xb0] sm:$0xff]   ;;  %v1636_v45 = vld [vmem:[%s2023_s7 + $0x38] sm:$0xff]   ;;  %v1638_v47 = vld [vmem:[%s2022_s6 + $0x40] sm:$0xff]  }
  0x15   : > { %v1637_v46 = vld [vmem:[%s2023_s7 + $0xb8] sm:$0xff]   ;;  %v1639_v48 = vld [vmem:[%s2022_s6 + $0xc0] sm:$0xff]   ;;  %v1665_v50 = vld [vmem:[%s2022_s6 + $0xb0] sm:$0xff]  }
  0x16   : > { %557 = vmatpush1.bf16.msra.mxu0 %v1600_v11  ;;  %598 = vmatpush1.bf16.msra.mxu1 %v1603_v12  ;;  %v1893_v53 = vld [vmem:[%s2019_s3] sm:$0xf] }
  0x17   : > { %1491 = vmatprep.subr.bf16.mxu0 %v1606_v14  ;;  %1513 = vmatprep.subr.bf16.mxu1 %v1607_v16  ;;  %v488_v60 = vld [vmem:[%s2021_s5] sm:$0xf]  ;;  %v360_v1 = vrot.slane %v1893_v53, %v359_v54  ;;  %v368_v3 = vrot.slane %v1893_v53, %v367_v57 }
  0x18   : > { %v493_v2 = vrot.slane %v488_v60, %v355_v61  ;;  %v501_v4 = vrot.slane %v488_v60, %v363_v0  ;;  %v497_v5 = vrot.slane %v488_v60, %v359_v54  ;;  %v505_v6 = vrot.slane %v488_v60, %v367_v57  ;;  %v1656_v49 = vld [vmem:[%s2022_s6 + $0x20] sm:$0xff]   ;;  %v1660_v57 = vld [vmem:[%s2022_s6 + $0x28] sm:$0xff]   ;;  %v1662_v60 = vld [vmem:[%s2022_s6 + $0x70] sm:$0xff]  }
  0x19   : > { %1422 = vmatmul.mubr.msk.bf16.vlgmr.msra.gmra.mrb[4].mxu0 %vm550_vm1, %v479_v15  ;;  %1423 = vmatmul.mubr.msk.bf16.vlgmr.msra.gmra.mrb[4].mxu1 %vm550_vm1, %v479_v15  ;;  %v1657_v54 = vld [vmem:[%s2022_s6 + $0xa0] sm:$0xff]  }
  0x1a   : > { %1492 = vmatpush3.bf16.msra.mxu0 %v1608_v17  ;;  %1514 = vmatpush3.bf16.msra.mxu1 %v1609_v18 }
  0x1b   : > { %1493 = vmatprep.subr.bf16.mxu0 %v1610_v19  ;;  %1515 = vmatprep.subr.bf16.mxu1 %v1611_v20 }
  0x1e   : > { %1494 = vmatpush3.bf16.msra.mxu0 %v1612_v21  ;;  %1516 = vmatpush3.bf16.msra.mxu1 %v1613_v22 }
  0x1f   : > { %1495 = vmatprep.subr.bf16.mxu0 %v1614_v23  ;;  %1517 = vmatprep.subr.bf16.mxu1 %v1615_v24 }
  0x22   : > { %1496 = vmatpush3.bf16.msra.mxu0 %v1616_v25  ;;  %1518 = vmatpush3.bf16.msra.mxu1 %v1617_v26 }
  0x23   : > { %1497 = vmatprep.subr.bf16.mxu0 %v1618_v27  ;;  %1519 = vmatprep.subr.bf16.mxu1 %v1619_v28 }
  0x26   : > { %1498 = vmatpush3.bf16.msra.mxu0 %v1620_v29  ;;  %1520 = vmatpush3.bf16.msra.mxu1 %v1621_v30  ;;  %v1640_v29 = vld [vmem:[%s2022_s6] sm:$0xff]  }
  0x27   : > { %1499 = vmatprep.subr.bf16.mxu0 %v1622_v31  ;;  %1521 = vmatprep.subr.bf16.mxu1 %v1623_v32  ;;  %v1641_v32 = vld [vmem:[%s2022_s6 + $0x80] sm:$0xff]  }
  0x2a   : > { %1500 = vmatpush3.bf16.msra.mxu0 %v1624_v33  ;;  %1522 = vmatpush3.bf16.msra.mxu1 %v1625_v34  ;;  %v1642_v33 = vld [vmem:[%s2022_s6 + $0x48] sm:$0xff]  }
  0x2b   : > { %1501 = vmatprep.subr.bf16.mxu0 %v1626_v35  ;;  %1523 = vmatprep.subr.bf16.mxu1 %v1627_v36  ;;  %v1643_v35 = vld [vmem:[%s2022_s6 + $0xc8] sm:$0xff]  }
  0x2e   : > { %1502 = vmatpush3.bf16.msra.mxu0 %v1628_v37  ;;  %1524 = vmatpush3.bf16.msra.mxu1 %v1629_v38  ;;  %v1644_v37 = vld [vmem:[%s2022_s6 + $0x8] sm:$0xff]  }
  0x2f   : > { %1503 = vmatprep.subr.bf16.mxu0 %v1630_v39  ;;  %1525 = vmatprep.subr.bf16.mxu1 %v1631_v40  ;;  %v1645_v38 = vld [vmem:[%s2022_s6 + $0x88] sm:$0xff]   ;;  %v1646_v39 = vld [vmem:[%s2022_s6 + $0x50] sm:$0xff]  }
  0x30   : > { %v1647_v40 = vld [vmem:[%s2022_s6 + $0xd0] sm:$0xff]  }
  0x32   : > { %1504 = vmatpush3.bf16.msra.mxu0 %v1632_v41  ;;  %1526 = vmatpush3.bf16.msra.mxu1 %v1633_v42  ;;  %v1648_v41 = vld [vmem:[%s2022_s6 + $0x10] sm:$0xff]  }
  0x33   : > { %1505 = vmatprep.subr.bf16.mxu0 %v1634_v43  ;;  %1527 = vmatprep.subr.bf16.mxu1 %v1635_v44  ;;  %v1649_v42 = vld [vmem:[%s2022_s6 + $0x90] sm:$0xff]   ;;  %v1650_v43 = vld [vmem:[%s2022_s6 + $0x58] sm:$0xff]  }
  0x34   : > { %v1651_v44 = vld [vmem:[%s2022_s6 + $0xd8] sm:$0xff]  }
  0x36   : > { %1506 = vmatpush3.bf16.msra.mxu0 %v1636_v45  ;;  %1528 = vmatpush3.bf16.msra.mxu1 %v1637_v46  ;;  %v1652_v45 = vld [vmem:[%s2022_s6 + $0x18] sm:$0xff]  }
  0x37   : > { %1535 = vmatprep.subr.bf16.mxu0 %v1638_v47  ;;  %1557 = vmatprep.subr.bf16.mxu1 %v1639_v48  ;;  %v1653_v46 = vld [vmem:[%s2022_s6 + $0x98] sm:$0xff]   ;;  %v1654_v47 = vld [vmem:[%s2022_s6 + $0x60] sm:$0xff]  }
  0x38   : > { %v1655_v48 = vld [vmem:[%s2022_s6 + $0xe0] sm:$0xff]  }
  0xe4   : > { %v1886_v51 = vpop.f32.mrb[0].mxu0  ;;  %v1888_v52 = vpop.f32.mrb[0].mxu1 }
  0xe5   : > { %v433_v55 = vpop.f32.mrb[1].mxu0  ;;  %v474_v56 = vpop.f32.mrb[1].mxu1 }
  0xe6   : > { %v435_v58 = vpop.f32.mrb[2].mxu0  ;;  %v476_v59 = vpop.f32.mrb[2].mxu1  ;;  %v434_v8 = vadd.f32 %v433_v55, %v360_v1  ;;  %v475_v12 = vadd.f32 %v474_v56, %v368_v3  ;;  %v1658_v55 = vld [vmem:[%s2022_s6 + $0x68] sm:$0xff]  }
  0xe7   : > { %v436_v62 = vpop.f32.mrb[3].mxu0  ;;  %v477_v63 = vpop.f32.mrb[3].mxu1  ;;  %v1659_v56 = vld [vmem:[%s2022_s6 + $0xe8] sm:$0xff]   ;;  %v356_v58 = vrot.slane %v1893_v53, %v355_v61  ;;  %v1664_v61 = vld [vmem:[%s2022_s6 + $0x30] sm:$0xff]  }
  0xe8   : > { %v637_v24 = vmax.f32 %v434_v8, 0.0  ;;  %v639_v26 = vmax.f32 %v475_v12, 0.0  ;;  %v1661_v59 = vld [vmem:[%s2022_s6 + $0xa8] sm:$0xff]   ;;  %v364_v62 = vrot.slane %v1893_v53, %v363_v0  ;;  %v1663_v63 = vld [vmem:[%s2022_s6 + $0xf0] sm:$0xff]   ;;  %v1666_v53 = vld [vmem:[%s2022_s6 + $0x78] sm:$0xff]  }
  0xe9   : > { %v432_v1 = vadd.f32 %v1886_v51, %v356_v58  ;;  %v1668_v51 = vld [vmem:[%s2022_s6 + $0x38] sm:$0xff]  }
  0xea   : > { %v645_v34 = vpack.c.bf16 %v637_v24, %v637_v24  ;;  %v647_v36 = vpack.c.bf16 %v639_v26, %v639_v26  ;;  %v473_v0 = vadd.f32 %v1888_v52, %v364_v62 }
  0xeb   : > { %v636_v3 = vmax.f32 %v432_v1, 0.0 }
  0xec   : > { %v588_v7 = vpop.f32.mrb[4].mxu0  ;;  %v629_v10 = vpop.f32.mrb[4].mxu1 }
  0xed   : > { %v589_v9 = vadd.f32 %v588_v7, %v493_v2  ;;  %v590_v11 = vpop.f32.mrb[5].mxu0  ;;  %v630_v13 = vadd.f32 %v629_v10, %v501_v4  ;;  %v631_v15 = vpop.f32.mrb[5].mxu1  ;;  %v1667_v2 = vld [vmem:[%s2022_s6 + $0xf8] sm:$0xff]   ;;  %v644_v52 = vpack.c.bf16 %v636_v3, %v636_v3 }
  0xee   : > { %v591_v14 = vadd.f32 %v590_v11, %v497_v5  ;;  %v592_v16 = vpop.f32.mrb[6].mxu0  ;;  %v632_v18 = vadd.f32 %v631_v15, %v505_v6  ;;  %v633_v19 = vpop.f32.mrb[6].mxu1  ;;  %v1669_v4 = vld [vmem:[%s2022_s6 + $0xb8] sm:$0xff]   ;;  %v638_v5 = vmax.f32 %v473_v0, 0.0 }
  0xef   : > { %v640_v17 = vmax.f32 %v589_v9, 0.0  ;;  %v593_v20 = vpop.f32.mrb[7].mxu0  ;;  %v642_v21 = vmax.f32 %v630_v13, 0.0  ;;  %v634_v23 = vpop.f32.mrb[7].mxu1 }
  0xf0   : > { %v641_v22 = vmax.f32 %v591_v14, 0.0  ;;  %v643_v25 = vmax.f32 %v632_v18, 0.0  ;;  %v646_v6 = vpack.c.bf16 %v638_v5, %v638_v5 }
  0xf1   : > { %v714_v27 = vpack.c.bf16 %v642_v21, %v642_v21  ;;  %v712_v30 = vpack.c.bf16 %v640_v17, %v640_v17 }
  0xf2   : > { %v713_v28 = vpack.c.bf16 %v641_v22, %v641_v22  ;;  %v715_v31 = vpack.c.bf16 %v643_v25, %v643_v25 }
  0xf4   : > { %1004 = vmatprep.mubr.bf16.mxu0 %v713_v28  ;;  %1044 = vmatprep.mubr.bf16.mxu1 %v715_v31 }
  0xf5   : > { %1005 = vmatmul.mubr.bf16.vlgmr.msra.gmra.mrb[8].mxu0 %v712_v30  ;;  %1045 = vmatmul.mubr.bf16.vlgmr.msra.gmra.mrb[8].mxu1 %v714_v27 }
  0xf6   : > { %1536 = vmatpush3.bf16.msra.mxu0 %v1640_v29  ;;  %1558 = vmatpush3.bf16.msra.mxu1 %v1641_v32  ;;  %v1488_v29 = vld [vmem:[%s2024_s8] ss:$0 sm:$0xff] }
  0xf7   : > { %1276 = vmatprep.mubr.bf16.mxu0 %v645_v34  ;;  %1316 = vmatprep.mubr.bf16.mxu1 %v647_v36 }
  0xf8   : > { %1537 = vmatprep.subr.bf16.mxu0 %v1642_v33  ;;  %1559 = vmatprep.subr.bf16.mxu1 %v1643_v35 }
  0xfa   : > { %1538 = vmatpush3.bf16.msra.mxu0 %v1644_v37  ;;  %1560 = vmatpush3.bf16.msra.mxu1 %v1645_v38 }
  0xfb   : > { %1539 = vmatprep.subr.bf16.mxu0 %v1646_v39  ;;  %1561 = vmatprep.subr.bf16.mxu1 %v1647_v40 }
  0xfe   : > { %1540 = vmatpush3.bf16.msra.mxu0 %v1648_v41  ;;  %1562 = vmatpush3.bf16.msra.mxu1 %v1649_v42 }
  0xff   : > { %1541 = vmatprep.subr.bf16.mxu0 %v1650_v43  ;;  %1563 = vmatprep.subr.bf16.mxu1 %v1651_v44 }
 0x102   : > { %1542 = vmatpush3.bf16.msra.mxu0 %v1652_v45  ;;  %1564 = vmatpush3.bf16.msra.mxu1 %v1653_v46 }
 0x103   : > { %1543 = vmatprep.subr.bf16.mxu0 %v1654_v47  ;;  %1565 = vmatprep.subr.bf16.mxu1 %v1655_v48 }
 0x106   : > { %1544 = vmatpush3.bf16.msra.mxu0 %v1656_v49  ;;  %1566 = vmatpush3.bf16.msra.mxu1 %v1657_v54 }
 0x107   : > { %1545 = vmatprep.subr.bf16.mxu0 %v1658_v55  ;;  %1567 = vmatprep.subr.bf16.mxu1 %v1659_v56 }
 0x10a   : > { %1546 = vmatpush3.bf16.msra.mxu0 %v1660_v57  ;;  %1568 = vmatpush3.bf16.msra.mxu1 %v1661_v59 }
 0x10b   : > { %1547 = vmatprep.subr.bf16.mxu0 %v1662_v60  ;;  %1569 = vmatprep.subr.bf16.mxu1 %v1663_v63 }
 0x10e   : > { %1548 = vmatpush3.bf16.msra.mxu0 %v1664_v61  ;;  %1570 = vmatpush3.bf16.msra.mxu1 %v1665_v50 }
 0x10f   : > { %1549 = vmatprep.subr.bf16.mxu0 %v1666_v53  ;;  %1571 = vmatprep.subr.bf16.mxu1 %v1667_v2 }
 0x112   : > { %1550 = vmatpush3.bf16.msra.mxu0 %v1668_v51  ;;  %1572 = vmatpush3.bf16.msra.mxu1 %v1669_v4 }
 0x115   : > { %1277 = vmatmul.mubr.bf16.vlgmr.msra.gmra.mrb[12].mxu0 %v644_v52  ;;  %1317 = vmatmul.mubr.bf16.vlgmr.msra.gmra.mrb[12].mxu1 %v646_v6 }
 0x1c8   : > { %v1507_v7 = vpop.f32.mrb[8].mxu0  ;;  %v1529_v8 = vpop.f32.mrb[8].mxu1 }
 0x1c9   : > { %v1508_v9 = vpop.f32.mrb[9].mxu0  ;;  %v1530_v11 = vpop.f32.mrb[9].mxu1 }
 0x1ca   : > { %v1509_v10 = vadd.f32 %v1508_v9, %v1507_v7  ;;  %v1510_v12 = vpop.f32.mrb[10].mxu0  ;;  %v1531_v13 = vadd.f32 %v1530_v11, %v1529_v8  ;;  %v1532_v14 = vpop.f32.mrb[10].mxu1 }
 0x1cb   : > { %v1511_v15 = vpop.f32.mrb[11].mxu0  ;;  %v1533_v16 = vpop.f32.mrb[11].mxu1 }
 0x1cc   : > { %v1047_v17 = vadd.f32 %v1531_v13, %v1509_v10 }
 0x1e8   : > { %v1551_v18 = vpop.f32.mrb[12].mxu0  ;;  %v1573_v19 = vpop.f32.mrb[12].mxu1 }
 0x1e9   : > { %v1552_v20 = vpop.f32.mrb[13].mxu0  ;;  %v1574_v22 = vpop.f32.mrb[13].mxu1 }
 0x1ea   : > { %v1553_v21 = vadd.f32 %v1552_v20, %v1551_v18  ;;  %v1554_v23 = vpop.f32.mrb[14].mxu0  ;;  %v1575_v24 = vadd.f32 %v1574_v22, %v1573_v19  ;;  %v1576_v25 = vpop.f32.mrb[14].mxu1 }
 0x1eb   : > { %v1555_v26 = vpop.f32.mrb[15].mxu0  ;;  %v1577_v28 = vpop.f32.mrb[15].mxu1 }
 0x1ec   : > { %v1279_v27 = vadd.f32 %v1553_v21, %v1047_v17 }
 0x1ee   : > { %v1319_v30 = vadd.f32 %v1575_v24, %v1279_v27 }
 0x1f0   : > { %v1331_v31 = vadd.f32 %v1488_v29, %v1319_v30 }
 0x1f2   : > { %v1332_v32 = vmax.f32 %v1331_v31, 0.0 }
 0x1f4   : > { %1334 = vst.msk [vmem:[%s344_s27] sm:$0xff] %vm1333_vm2, %v1332_v32 }
 0x1f5 PF: > { %s19_s30 = sadd.s32 1, %s1676_s30  }
 0x1f6   : > { %p16_p4 = scmp.ge.s32.totalorder %s19_s30, 4  }
 0x1f8   :  { %18 = sbr.rel (!%p16_p4) target bundleno = 1 (0x1), region = 89 }

</bundles_post_ra>
